<compile_context>
chip_gen: v6e
topology: v6e:2x2x1
jax: 0.10.0
libtpu: 0.0.40
codegen_flags: <defaults>
</compile_context>

<pallas_src>
import jax
import jax.numpy as jnp
from jax.experimental import pallas as pl
from jax.experimental.pallas import tpu as pltpu


def _bev_copy_kernel(x_ref, o_ref):
    # One lane-dense (TILE_R, H*W) slab per grid step: pure VMEM tile copy,
    # binding resource is HBM bandwidth.
    o_ref[...] = x_ref[...]


# ~2 MiB per block; with double-buffered input + output (4 live buffers) this
# stays comfortably under the default scoped VMEM on v5e/v6e/v7x while being
# large enough to sit at ~85% of the measured HBM copy roofline.
_TARGET_BLOCK_BYTES = 2 * 1024 * 1024


def _pick_row_tile(num_rows, row_bytes):
    tile = _TARGET_BLOCK_BYTES // max(int(row_bytes), 1)
    tile = (tile // 8) * 8          # sublane-aligned (multiple of 8)
    tile = max(tile, 8)
    if tile >= num_rows:
        return num_rows             # full-dim block is always legal
    return tile


def height_compression(spatial_features_3d):
    """(N, C, D, H, W) -> (N, C*D, H, W), matching PyTorch's contiguous .view.

    NOTE: on contiguous data this is a free metadata reshape; prefer
    `spatial_features_3d.reshape(N, C * D, H, W)` unless a materializing
    fusion point is explicitly wanted.  The Pallas path below is that fusion
    anchor, written to run at the HBM roofline.
    """
    N, C, D, H, W = spatial_features_3d.shape
    R = N * C * D
    L = H * W
    dtype = spatial_features_3d.dtype

    # Free metadata reshape to a lane-dense 2D slab (last dim = H*W).
    x2 = spatial_features_3d.reshape(R, L)

    row_bytes = L * jnp.dtype(dtype).itemsize
    tile_r = _pick_row_tile(R, row_bytes)
    grid = (pl.cdiv(R, tile_r),)

    out2 = pl.pallas_call(
        _bev_copy_kernel,
        out_shape=jax.ShapeDtypeStruct((R, L), dtype),
        grid=grid,
        in_specs=[pl.BlockSpec((tile_r, L), lambda i: (i, 0))],
        out_specs=pl.BlockSpec((tile_r, L), lambda i: (i, 0)),
        compiler_params=pltpu.CompilerParams(
            # Single independent axis: lets Mosaic shard the copy across the
            # 2 TensorCores on v7x; harmless on v5e/v6e.
            dimension_semantics=("parallel",),
        ),
    )(x2)

    # Free metadata reshape back to BEV layout.
    return out2.reshape(N, C * D, H, W)


# jit wrapper: shapes are static at trace time so tile selection is static.
height_compression = jax.jit(height_compression)


def height_compression_forward(batch_dict):
    """Mirrors HeightCompression.forward on a JAX batch_dict."""
    # TODO(synk): spconv SparseConvTensor.dense() scatter (sparse->dense
    # densification) has no clean Pallas equivalent here; the input is assumed
    # already densified to NCDHW upstream.
    batch_dict['spatial_features_stride'] = batch_dict['encoded_spconv_tensor_stride']
    dense = batch_dict['encoded_spconv_tensor']
    batch_dict['spatial_features'] = height_compression(dense)
    return batch_dict


if __name__ == "__main__":
    key = jax.random.PRNGKey(0)

    # Small shapes: N=2, C=4 (voxel feature channels), D=2 (height bins),
    # H=W=16 spatial.  NUM_BEV_FEATURES = C * D = 8.
    N, C, D, H, W = 2, 4, 2, 16, 16
    x = jax.random.normal(key, (N, C, D, H, W), dtype=jnp.float32)

    batch_dict = {
        'encoded_spconv_tensor': x,
        'encoded_spconv_tensor_stride': 8,
    }

    out_dict = height_compression_forward(batch_dict)
    spatial_features = jax.block_until_ready(out_dict['spatial_features'])

    # Reference: PyTorch's .view(N, C*D, H, W) on a contiguous NCDHW tensor.
    ref = x.reshape(N, C * D, H, W)
    assert spatial_features.shape == (N, C * D, H, W)
    assert spatial_features.dtype == x.dtype
    assert out_dict['spatial_features_stride'] == 8
    assert bool(jnp.array_equal(spatial_features, ref))

    print("KERNEL_OK")
</pallas_src>

<mosaic_0001>
module attributes {stable_mosaic.version = 11 : i64} {
  func.func @_bev_copy_kernel(%arg0: i32, %arg1: memref<16x256xf32, #tpu.memory_space<vmem>>, %arg2: memref<16x256xf32, #tpu.memory_space<vmem>>) attributes {dimension_semantics = [#tpu.dimension_semantics<parallel>], iteration_bounds = array<i64: 1>, scalar_prefetch = 0 : i64, scratch_operands = 0 : i64, tpu.core_type = #tpu.core_type<tc>, window_params = [{transform_indices = @transform_0, window_bounds = array<i64: 16, 256>}, {transform_indices = @transform_1, window_bounds = array<i64: 16, 256>}]} {
    %c0 = arith.constant 0 : index
    %c0_0 = arith.constant 0 : index
    %0 = vector.load %arg1[%c0, %c0_0] : memref<16x256xf32, #tpu.memory_space<vmem>>, vector<16x256xf32>
    %c0_1 = arith.constant 0 : index
    %c0_2 = arith.constant 0 : index
    %1 = vector.load %arg2[%c0_1, %c0_2] : memref<16x256xf32, #tpu.memory_space<vmem>>, vector<16x256xf32>
    tpu.vector_store %arg2[%c0_1, %c0_2], %0 {strides = array<i32>} : memref<16x256xf32, #tpu.memory_space<vmem>>, vector<16x256xf32>,
    return
  }
  func.func @transform_0(%arg0: i32) -> (i32, i32) {
    %c0_i32 = arith.constant 0 : i32
    %c0_i32_0 = arith.constant 0 : i32
    return %arg0, %c0_i32 : i32, i32
  }
  func.func @transform_1(%arg0: i32) -> (i32, i32) {
    %c0_i32 = arith.constant 0 : i32
    %c0_i32_0 = arith.constant 0 : i32
    return %arg0, %c0_i32 : i32, i32
  }
}

</mosaic_0001>

<bundles_post_ra>
// kernel: height_compression.1
= control target key start
LH: loop header
LB: loop body
LE: loop exit
PB: predicated region body
PF: predicated region fallthrough
CT: control target
= control target key end

     0   :  { %s54_s0 = inlined_call_operand.vmem [shape: f32[16,256], index: 0, kind: input, shape index: {}]   ;;  %s55_s1 = inlined_call_operand.vmem [shape: f32[16,256], index: 1, kind: output, shape index: {}]  }
   0x1   :  { %v8_v0 = vld [vmem:[%s54_s0] sm:$0xff]  ;;  %v9_v1 = vld [vmem:[%s54_s0 + $0x8] sm:$0xff]  ;;  %v10_v2 = vld [vmem:[%s54_s0 + $0x10] sm:$0xff] }
   0x2   :  { %12 = vst [vmem:[%s55_s1] sm:$0xff] %v8_v0  ;;  %13 = vst [vmem:[%s55_s1 + $0x8] sm:$0xff] %v9_v1  ;;  %v11_v3 = vld [vmem:[%s54_s0 + $0x18] sm:$0xff] }
   0x3   :  { %14 = vst [vmem:[%s55_s1 + $0x10] sm:$0xff] %v10_v2  ;;  %15 = vst [vmem:[%s55_s1 + $0x18] sm:$0xff] %v11_v3 }

</bundles_post_ra>
